<compile_context>
chip_gen: v6e
topology: v6e:2x2x1
jax: 0.10.0
libtpu: 0.0.40
codegen_flags: <defaults>
</compile_context>

<pallas_src>
import functools

import jax
import jax.numpy as jnp
from jax.experimental import pallas as pl
from jax.experimental.pallas import tpu as pltpu


def _round_up(x, m):
    return ((x + m - 1) // m) * m


def _joint_s1_kernel(pred_ref, gt_ref, out_ref, *,
                     joint_dim, beta, half_over_beta, half_beta, final_scale):
    """One lane-block of the masked smooth-L1 reduction.

    pred_ref : (DP, TC) block      — channels on sublanes, samples (B*N) on lanes.
    gt_ref   : (joint_dim+1, TC)   — row `joint_dim` is the visibility flag.
    out_ref  : (1, 1) f32 VMEM block, resident across the grid (accumulator).
    """
    k = pl.program_id(0)

    @pl.when(k == 0)
    def _init():
        out_ref[...] = jnp.zeros_like(out_ref)

    # Slice coords / visibility INSIDE the kernel (cheap static sublane slices).
    pred = pred_ref[0:joint_dim, :].astype(jnp.float32)
    coords = gt_ref[0:joint_dim, :].astype(jnp.float32)
    vis = gt_ref[joint_dim:joint_dim + 1, :].astype(jnp.float32)

    l1 = jnp.abs(pred - coords)
    # smooth-L1: where(l1 < beta, 0.5*l1^2/beta, l1 - 0.5*beta) with the divide
    # pre-folded into half_over_beta.
    loss = jnp.where(l1 < beta, l1 * l1 * half_over_beta, l1 - half_beta)
    loss = loss * vis  # (1, TC) visibility broadcast across the coord sublanes

    # Full reduction of this block; keepdims -> (1, 1) so the update is a
    # full-ref store (no masked scalar stores, no SMEM transfer).
    out_ref[...] += jnp.sum(loss, keepdims=True)

    @pl.when(k == pl.num_programs(0) - 1)
    def _finalize():
        out_ref[...] = out_ref[...] * final_scale


def joint_s1_loss(pred, gt, *, beta, weight=1.0, lane_block=32768):
    """JointS1Loss.forward (optionally pre-scaled by `weight`) via Pallas."""
    B, N, gt_c = gt.shape
    joint_dim = gt_c - 1
    dp = pred.shape[2]
    L = B * N

    # Layout plumbing: big B*N axis -> lanes, tiny channel axis -> sublanes.
    pred_t = pred.reshape(L, dp).T       # (dp, L)
    gt_t = gt.reshape(L, gt_c).T         # (joint_dim + 1, L)

    # Pad the lane axis to a whole number of 128-multiple blocks.  Zero padding
    # is inert: padded columns have visibility 0, so they contribute nothing.
    tc = min(_round_up(L, 128), lane_block)
    Lp = _round_up(L, tc)
    if Lp != L:
        pred_t = jnp.pad(pred_t, ((0, 0), (0, Lp - L)))
        gt_t = jnp.pad(gt_t, ((0, 0), (0, Lp - L)))
    n_blocks = Lp // tc

    # mean(dim=2).mean(dim=1).mean(dim=0) over uniform shapes == global mean.
    inv_count = 1.0 / float(B * N * joint_dim)
    kernel = functools.partial(
        _joint_s1_kernel,
        joint_dim=joint_dim,
        beta=float(beta),
        half_over_beta=0.5 / float(beta),
        half_beta=0.5 * float(beta),
        final_scale=inv_count * float(weight),
    )

    out = pl.pallas_call(
        kernel,
        out_shape=jax.ShapeDtypeStruct((1, 1), jnp.float32),
        grid_spec=pltpu.PrefetchScalarGridSpec(
            num_scalar_prefetch=0,
            grid=(n_blocks,),
            in_specs=[
                pl.BlockSpec((dp, tc), lambda k: (0, k)),
                pl.BlockSpec((gt_c, tc), lambda k: (0, k)),
            ],
            out_specs=pl.BlockSpec((1, 1), lambda k: (0, 0)),
        ),
        compiler_params=pltpu.CompilerParams(
            dimension_semantics=("arbitrary",)),
    )(pred_t, gt_t)
    return out[0, 0]


def tokenizer_loss(output_joints, joints, e_latent_loss, *,
                   joint_loss_w, e_loss_w, beta=0.05):
    """Tokenizer_loss.forward -> [joint_loss * joint_loss_w, e_latent_loss * e_loss_w]."""
    joint_loss = joint_s1_loss(output_joints, joints, beta=beta,
                               weight=joint_loss_w)
    # Single scalar multiply; no Pallas benefit, kept in plain JAX.
    e_latent = jnp.asarray(e_latent_loss, jnp.float32) * e_loss_w
    return [joint_loss, e_latent]


def _reference_tokenizer_loss(output_joints, joints, e_latent_loss,
                              joint_loss_w, e_loss_w, beta):
    joint_dim = joints.shape[2] - 1
    visible = joints[..., joint_dim:]
    p = output_joints[..., :joint_dim]
    g = joints[..., :joint_dim]
    l1 = jnp.abs(p - g)
    loss = jnp.where(l1 < beta, 0.5 * l1 ** 2 / beta, l1 - 0.5 * beta)
    loss = loss * visible
    joint_loss = loss.mean(axis=2).mean(axis=1).mean(axis=0) * joint_loss_w
    return [joint_loss, e_latent_loss * e_loss_w]


if __name__ == "__main__":
    # Small shapes consistent with the module: batch=2, 16 joints, 2D coords,
    # gt carries an extra visibility channel; e_latent_loss is a scalar.
    B, N, D = 2, 16, 2
    joint_loss_w, e_loss_w, beta = 1.0, 15.0, 0.05

    key = jax.random.PRNGKey(0)
    k_pred, k_gt, k_vis, k_e = jax.random.split(key, 4)
    output_joints = jax.random.normal(k_pred, (B, N, D), dtype=jnp.float32)
    gt_xy = jax.random.normal(k_gt, (B, N, D), dtype=jnp.float32)
    vis = (jax.random.uniform(k_vis, (B, N, 1)) > 0.3).astype(jnp.float32)
    joints = jnp.concatenate([gt_xy, vis], axis=-1)
    e_latent_loss = jax.random.uniform(k_e, (), dtype=jnp.float32)

    losses = tokenizer_loss(output_joints, joints, e_latent_loss,
                            joint_loss_w=joint_loss_w, e_loss_w=e_loss_w,
                            beta=beta)
    losses = jax.block_until_ready(losses)

    ref = _reference_tokenizer_loss(output_joints, joints, e_latent_loss,
                                    joint_loss_w, e_loss_w, beta)
    assert jnp.allclose(losses[0], ref[0], atol=1e-5, rtol=1e-5), (losses[0], ref[0])
    assert jnp.allclose(losses[1], ref[1], atol=1e-6, rtol=1e-6), (losses[1], ref[1])
    print("KERNEL_OK")
</pallas_src>

<mosaic_0001>
module attributes {stable_mosaic.version = 11 : i64} {
  func.func @_joint_s1_kernel(%arg0: i32, %arg1: memref<2x128xf32, #tpu.memory_space<vmem>>, %arg2: memref<3x128xf32, #tpu.memory_space<vmem>>, %arg3: memref<1x1xf32, #tpu.memory_space<vmem>>) attributes {dimension_semantics = [#tpu.dimension_semantics<arbitrary>], iteration_bounds = array<i64: 1>, scalar_prefetch = 0 : i64, scratch_operands = 0 : i64, tpu.core_type = #tpu.core_type<tc>, window_params = [{transform_indices = @transform_0, window_bounds = array<i64: 2, 128>}, {transform_indices = @transform_1, window_bounds = array<i64: 3, 128>}, {pipeline_mode = #tpu.pipeline_mode<synchronous>, transform_indices = @transform_2, window_bounds = array<i64: 1, 1>}]} {
    %c0_i32 = arith.constant 0 : i32
    %0 = arith.cmpi eq, %arg0, %c0_i32 : i32
    %1 = arith.extui %0 : i1 to i32
    %c0_i32_0 = arith.constant 0 : i32
    %2 = arith.cmpi ne, %1, %c0_i32_0 : i32
    scf.if %2 {
      %cst_14 = arith.constant 0.000000e+00 : f32
      %29 = vector.broadcast %cst_14 : f32 to vector<1x1xf32>
      %c0_15 = arith.constant 0 : index
      %c0_16 = arith.constant 0 : index
      %30 = vector.load %arg3[%c0_15, %c0_16] : memref<1x1xf32, #tpu.memory_space<vmem>>, vector<1x1xf32>
      tpu.vector_store %arg3[%c0_15, %c0_16], %29 {strides = array<i32>} : memref<1x1xf32, #tpu.memory_space<vmem>>, vector<1x1xf32>,
    } else {
    }
    %c0 = arith.constant 0 : index
    %c0_1 = arith.constant 0 : index
    %3 = vector.load %arg1[%c0, %c0_1] : memref<2x128xf32, #tpu.memory_space<vmem>>, vector<2x128xf32>
    %c0_2 = arith.constant 0 : index
    %c0_3 = arith.constant 0 : index
    %4 = vector.load %arg2[%c0_2, %c0_3] : memref<3x128xf32, #tpu.memory_space<vmem>>, vector<2x128xf32>
    %c2 = arith.constant 2 : index
    %c0_4 = arith.constant 0 : index
    %5 = vector.load %arg2[%c2, %c0_4] : memref<3x128xf32, #tpu.memory_space<vmem>>, vector<1x128xf32>
    %6 = arith.subf %3, %4 : vector<2x128xf32>
    %7 = math.absf %6 : vector<2x128xf32>
    %cst = arith.constant 5.000000e-02 : f32
    %8 = vector.broadcast %cst : f32 to vector<2x128xf32>
    %9 = arith.cmpf olt, %7, %8 : vector<2x128xf32>
    %10 = arith.mulf %7, %7 : vector<2x128xf32>
    %cst_5 = arith.constant 1.000000e+01 : f32
    %11 = vector.broadcast %cst_5 : f32 to vector<2x128xf32>
    %12 = arith.mulf %10, %11 : vector<2x128xf32>
    %cst_6 = arith.constant 2.500000e-02 : f32
    %13 = vector.broadcast %cst_6 : f32 to vector<2x128xf32>
    %14 = arith.subf %7, %13 : vector<2x128xf32>
    %15 = arith.select %9, %12, %14 : vector<2x128xi1>, vector<2x128xf32>
    %16 = vector.broadcast %5 : vector<1x128xf32> to vector<2x128xf32>
    %17 = arith.mulf %15, %16 : vector<2x128xf32>
    %c0_7 = arith.constant 0 : index
    %c0_8 = arith.constant 0 : index
    %18 = vector.load %arg3[%c0_7, %c0_8] : memref<1x1xf32, #tpu.memory_space<vmem>>, vector<1x1xf32>
    %19 = vector.shape_cast %17 : vector<2x128xf32> to vector<1x2x128xf32>
    %cst_9 = arith.constant dense<0.000000e+00> : vector<1xf32>
    %20 = vector.multi_reduction <add>, %19, %cst_9 [1, 2] : vector<1x2x128xf32> to vector<1xf32>
    %21 = vector.shape_cast %20 : vector<1xf32> to vector<1x1x1xf32>
    %22 = vector.extract %21[0, 0, 0] : f32 from vector<1x1x1xf32>
    %23 = vector.broadcast %22 : f32 to vector<1x1xf32>
    %24 = arith.addf %18, %23 : vector<1x1xf32>
    %c0_10 = arith.constant 0 : index
    %c0_11 = arith.constant 0 : index
    %25 = vector.load %arg3[%c0_10, %c0_11] : memref<1x1xf32, #tpu.memory_space<vmem>>, vector<1x1xf32>
    tpu.vector_store %arg3[%c0_10, %c0_11], %24 {strides = array<i32>} : memref<1x1xf32, #tpu.memory_space<vmem>>, vector<1x1xf32>,
    %c0_i32_12 = arith.constant 0 : i32
    %26 = arith.cmpi eq, %arg0, %c0_i32_12 : i32
    %27 = arith.extui %26 : i1 to i32
    %c0_i32_13 = arith.constant 0 : i32
    %28 = arith.cmpi ne, %27, %c0_i32_13 : i32
    scf.if %28 {
      %c0_14 = arith.constant 0 : index
      %c0_15 = arith.constant 0 : index
      %29 = vector.load %arg3[%c0_14, %c0_15] : memref<1x1xf32, #tpu.memory_space<vmem>>, vector<1x1xf32>
      %cst_16 = arith.constant 1.562500e-02 : f32
      %30 = vector.broadcast %cst_16 : f32 to vector<1x1xf32>
      %31 = arith.mulf %29, %30 : vector<1x1xf32>
      %c0_17 = arith.constant 0 : index
      %c0_18 = arith.constant 0 : index
      %32 = vector.load %arg3[%c0_17, %c0_18] : memref<1x1xf32, #tpu.memory_space<vmem>>, vector<1x1xf32>
      tpu.vector_store %arg3[%c0_17, %c0_18], %31 {strides = array<i32>} : memref<1x1xf32, #tpu.memory_space<vmem>>, vector<1x1xf32>,
    } else {
    }
    return
  }
  func.func @transform_0(%arg0: i32) -> (i32, i32) {
    %c0_i32 = arith.constant 0 : i32
    %c0_i32_0 = arith.constant 0 : i32
    return %c0_i32, %arg0 : i32, i32
  }
  func.func @transform_1(%arg0: i32) -> (i32, i32) {
    %c0_i32 = arith.constant 0 : i32
    %c0_i32_0 = arith.constant 0 : i32
    return %c0_i32, %arg0 : i32, i32
  }
  func.func @transform_2(%arg0: i32) -> (i32, i32) {
    %c0_i32 = arith.constant 0 : i32
    %c0_i32_0 = arith.constant 0 : i32
    %c0_i32_1 = arith.constant 0 : i32
    return %c0_i32, %c0_i32_0 : i32, i32
  }
}

</mosaic_0001>

<bundles_post_ra>
// kernel: tpu_custom_call.1
= control target key start
LH: loop header
LB: loop body
LE: loop exit
PB: predicated region body
PF: predicated region fallthrough
CT: control target
= control target key end

     0   :  { %7 = vsyncpa [#allocation3], 0  ;;  %s200_s0 = inlined_call_operand.hbm [shape: f32[2,128], index: 0, kind: input, shape index: {}]   ;;  %s201_s1 = inlined_call_operand.hbm [shape: f32[3,128], index: 1, kind: input, shape index: {}]   ;;  %s202_s2 = inlined_call_operand.hbm [shape: f32[1,1], index: 2, kind: output, shape index: {}]  }
   0x1   :  { %8 = vsyncpa [#allocation6], 0 }
   0x2   :  { %9 = vsyncpa [#allocation4], 0  ;;  %s169_s9 = smov [#allocation2]   ;;  %s170_s11 = smov [#allocation5]  }
   0x3   :  { %s16_s10 = sshll.u32 %s169_s9, 4  ;;  %s26_s12 = sshll.u32 %s170_s11, 4  ;;  %s17_s10 = int_to_ptr.vmem [resolvable:$true] %s16_s10  ;;  %s27_s12 = int_to_ptr.vmem [resolvable:$true] %s26_s12 }
   0x4   :  { %s111_s13 = scalar_lea.vmem %s17_s10, 32  ;;  %p116_p1 = scmp.lt.s32.totalorder %s17_s10, %s17_s10 }
   0x5   :  { %p112_p0 = scmp.ne.s32.totalorder %s17_s10, %s111_s13  ;;  %p117_p2 = scmp.lt.s32.totalorder %s111_s13, %s111_s13 }
   0x7   :  { %p118_p3 = por %p117_p2, %p116_p1 }
   0x9   :  { %p119_p4 = pnand %p118_p3, %p112_p0 }
   0xb   :  { %122 = shalt.err (!%p119_p4)
}
   0xc   :  { %19 = dma.hbm_to_vmem [thread:$0]  %s200_s0, 32, %s17_s10, [#allocation3]  }
   0xd   :  { %s131_s16 = scalar_lea.vmem %s27_s12, 64  ;;  %p136_p6 = scmp.lt.s32.totalorder %s27_s12, %s27_s12 }
   0xe   :  { %p132_p5 = scmp.ne.s32.totalorder %s27_s12, %s131_s16  ;;  %p137_p7 = scmp.lt.s32.totalorder %s131_s16, %s131_s16 }
  0x10   :  { %p138_p8 = por %p137_p7, %p136_p6 }
  0x12   :  { %p139_p9 = pnand %p138_p8, %p132_p5 }
  0x14   :  { %142 = shalt.err (!%p139_p9)
}
  0x15   :  { %29 = dma.hbm_to_vmem [thread:$0]  %s201_s1, 64, %s27_s12, [#allocation6]  }
  0x16   :  { %163 = dma.done.wait [#allocation3], 32  }
  0x17   :  { %164 = vsyncadd [#allocation3], 4294967264 }
  0x18   :  { %165 = dma.done.wait [#allocation6], 64  }
  0x19   :  { %166 = vsyncadd [#allocation6], 4294967232  ;;  %v42_v0 = vld [vmem:[#allocation2] sm:$0x3]  ;;  %v43_v1 = vld [vmem:[#allocation5] sm:$0x3] }
  0x1a   :  { %v45_v2 = vsub.f32 %v42_v0, %v43_v1  ;;  %v96_v6 = vld [vmem:[#allocation5 + $0x2] ss:$0 sm:$0xff]  ;;  %vm58_vm1 = vcmask 1041408   ;;  %vm40_vm2 = vcmask 0   ;;  %v171_v11 = vmov 0.0   ;;  %s172_s1 = smov [#allocation7]  }
  0x1b   :  { %41 = vst.msk [vmem:[#allocation7] sm:$0x1] %vm40_vm2, %v171_v11  ;;  %s85_s19 = sshll.u32 %s172_s1, 4  ;;  %s86_s19 = int_to_ptr.vmem [resolvable:$true] %s85_s19 }
  0x1c   :  { %v46_v3 = vand.u32 2147483647, %v45_v2  ;;  %s143_s20 = scalar_lea.vmem %s86_s19, 16  ;;  %s147_s21 = scalar_lea.vmem %s86_s19, 32 }
  0x1d   :  { %p144_p10 = scmp.ne.s32.totalorder %s86_s19, %s143_s20  ;;  %p148_p11 = scmp.lt.s32.totalorder %s86_s19, %s86_s19 }
  0x1e   :  { %v48_v4 = vmul.f32 %v46_v3, %v46_v3  ;;  %v95_v5 = vadd.f32 -0.025, %v46_v3  ;;  %vm47_vm0 = vcmp.lt.f32.partialorder %v46_v3, 0.05  ;;  %p149_p12 = scmp.lt.s32.totalorder %s147_s21, %s143_s20 }
  0x20   :  { %v49_v7 = vmul.f32 10.0, %v48_v4  ;;  %p150_p13 = por %p149_p12, %p148_p11 }
  0x22   :  { %v51_v8 = vsel %vm47_vm0, %v49_v7, %v95_v5  ;;  %v57_v19 = vld [vmem:[#allocation7] sm:$0x1]  ;;  %p151_p0 = pnand %p150_p13, %p144_p10 }
  0x23   :  { %v56_v9 = vmul.f32 %v96_v6, %v51_v8 }
  0x25   :  { %v59_v10 = vsel %vm58_vm1, %v56_v9, 0.0 }
  0x26   :  { %60 = vadd.xlane.f32.xlu0 %v59_v10 }
  0xaf   :  { %v61_v12 = vpop.xlane.xlu0 %60 }
  0xb0   :  { %v62_v13 = vrot.slane %v61_v12, 4 }
  0xb2   :  { %v63_v14 = vadd.f32 %v62_v13, %v61_v12 }
  0xb4   :  { %v64_v15 = vrot.slane %v63_v14, 2 }
  0xb6   :  { %v65_v16 = vadd.f32 %v64_v15, %v63_v14 }
  0xb8   :  { %v66_v17 = vrot.slane %v65_v16, 1 }
  0xba   :  { %v67_v18 = vadd.f32 %v66_v17, %v65_v16 }
  0xbc   :  { %97 = vpush %v67_v18 }
  0xed   :  { %s98_s0 = spop %97 }
  0xee   :  { %v69_v20 = vstv %s98_s0 }
  0xef   :  { %v70_v21 = vadd.f32 %v69_v20, %v57_v19 }
  0xf1   :  { %72 = vst.msk [vmem:[#allocation7] sm:$0x1] %vm40_vm2, %v70_v21 }
  0xf8   :  { %v76_v22 = vld [vmem:[#allocation7] sm:$0x1] }
  0xf9   :  { %v77_v23 = vmul.f32 0.015625, %v76_v22 }
  0xfb   :  { %78 = vst.msk [vmem:[#allocation7] sm:$0x1] %vm40_vm2, %v77_v23 }
  0xfc   :  { %154 = shalt.err (!%p151_p0)
}
  0xfd   :  { %88 = dma.vmem_to_hbm [thread:$0]  %s86_s19, 16, %s202_s2, [#allocation4]  }
  0xfe   :  { %167 = dma.done.wait [#allocation4], 16  }
  0xff   :  { %168 = vsyncadd [#allocation4], 4294967280 }
 0x100   :  { %92 = vsyncpa [#allocation3], 1 }
 0x101   :  { %93 = vsyncpa [#allocation6], 1 }
 0x102   :  { %94 = vsyncpa [#allocation4], 1 }

</bundles_post_ra>
